<compile_context>
chip_gen: v5e
topology: v5e:2x2
jax: 0.10.0
libtpu: 0.0.40
codegen_flags: <defaults>
</compile_context>

<pallas_src>
import math

import jax
import jax.numpy as jnp
from jax.experimental import pallas as pl
from jax.experimental.pallas import tpu as pltpu


def _action_stat_kernel(x_ref, scale_ref, shift_ref, o_ref):
    # x_ref/o_ref: (BLOCK_ROWS, L); scale_ref/shift_ref: (1, L) lane-broadcast.
    x = x_ref[...].astype(jnp.float32)
    o_ref[...] = (x * scale_ref[...] + shift_ref[...]).astype(o_ref.dtype)


def action_stat_forward(x, mean, std, *,
                        target_lanes=512,
                        target_block_bytes=2 * 1024 * 1024):
    """(x - mean) / (std + 1e-10) with length-d mean/std broadcast over 'b t (s d)'."""
    b, t, sd = x.shape
    d = mean.shape[0]
    assert sd % d == 0, "last dim must be a multiple of len(mean)"
    n = b * t * sd

    # ---- Glue (O(d)/O(L) work, done once): fold stats into scale/shift.
    inv_std = 1.0 / (std.astype(jnp.float32) + 1e-10)
    shift_d = -mean.astype(jnp.float32) * inv_std

    # Lane width L: multiple of lcm(d, 128); prefer one that divides n exactly
    # so the flat reshape is a free bitcast (no pad copy of x in HBM).
    base = math.lcm(d, 128)
    k_max = max(1, target_lanes // base)
    L = base * k_max
    for k in range(k_max, 0, -1):
        if n % (base * k) == 0:
            L = base * k
            break

    reps = L // d
    scale = jnp.tile(inv_std, reps).reshape(1, L)
    shift = jnp.tile(shift_d, reps).reshape(1, L)

    # ---- Flatten x into a lane-dense (rows, L) slab (native dtype, no cast).
    x_flat = x.reshape(-1)
    pad = (-n) % L
    if pad:
        # Rare path: only when no multiple of lcm(d,128) divides n.
        x_flat = jnp.pad(x_flat, (0, pad))
    rows = (n + pad) // L
    x2d = x_flat.reshape(rows, L)

    # ---- Block sizing: ~target_block_bytes per block, rows a multiple of 8,
    # never (much) larger than the array itself.
    bytes_per_row = L * x.dtype.itemsize
    block_rows = max(1, target_block_bytes // bytes_per_row)
    block_rows = min(block_rows, (rows + 7) // 8 * 8)
    block_rows = max(8, block_rows // 8 * 8)

    grid = (pl.cdiv(rows, block_rows),)  # partial last block handled by masking

    out2d = pl.pallas_call(
        _action_stat_kernel,
        out_shape=jax.ShapeDtypeStruct((rows, L), x.dtype),
        grid_spec=pltpu.PrefetchScalarGridSpec(
            num_scalar_prefetch=0,
            grid=grid,
            in_specs=[
                pl.BlockSpec((block_rows, L), lambda i: (i, 0)),
                # Constant block index -> block stays resident, single DMA.
                pl.BlockSpec((1, L), lambda i: (0, 0)),
                pl.BlockSpec((1, L), lambda i: (0, 0)),
            ],
            out_specs=pl.BlockSpec((block_rows, L), lambda i: (i, 0)),
        ),
        compiler_params=pltpu.CompilerParams(
            # Embarrassingly parallel: lets v7x shard grid steps across its
            # two TensorCores; no-op on v5e/v6e.
            dimension_semantics=("parallel",),
        ),
    )(x2d, scale, shift)

    out_flat = out2d.reshape(-1)
    if pad:
        out_flat = out_flat[:n]
    return out_flat.reshape(b, t, sd)


if __name__ == "__main__":
    key = jax.random.PRNGKey(0)
    k_x, k_mean, k_std = jax.random.split(key, 3)

    # Module "buffers": deterministic init in-script.
    d = 4          # len(mean)
    s = 4          # number of action groups per timestep
    b, t = 2, 8    # batch, sequence length
    mean = jax.random.normal(k_mean, (d,), dtype=jnp.float32)
    std = jnp.abs(jax.random.normal(k_std, (d,), dtype=jnp.float32)) + 0.5

    x = jax.random.normal(k_x, (b, t, s * d), dtype=jnp.float32)

    out = action_stat_forward(x, mean, std)
    out = jax.block_until_ready(out)

    # Pure-JAX reference check.
    x4 = x.reshape(b, t, s, d)
    ref = ((x4 - mean) / (std + 1e-10)).reshape(b, t, s * d)
    assert out.shape == (b, t, s * d)
    assert out.dtype == x.dtype
    assert jnp.allclose(out, ref, atol=1e-5, rtol=1e-5), "mismatch vs reference"

    print("KERNEL_OK")
</pallas_src>

<mosaic_0001>
module attributes {stable_mosaic.version = 11 : i64} {
  func.func @_action_stat_kernel(%arg0: i32, %arg1: memref<8x256xf32, #tpu.memory_space<vmem>>, %arg2: memref<1x256xf32, #tpu.memory_space<vmem>>, %arg3: memref<1x256xf32, #tpu.memory_space<vmem>>, %arg4: memref<8x256xf32, #tpu.memory_space<vmem>>) attributes {dimension_semantics = [#tpu.dimension_semantics<parallel>], iteration_bounds = array<i64: 1>, scalar_prefetch = 0 : i64, scratch_operands = 0 : i64, tpu.core_type = #tpu.core_type<tc>, window_params = [{transform_indices = @transform_0, window_bounds = array<i64: 8, 256>}, {pipeline_mode = #tpu.pipeline_mode<synchronous>, transform_indices = @transform_1, window_bounds = array<i64: 1, 256>}, {pipeline_mode = #tpu.pipeline_mode<synchronous>, transform_indices = @transform_2, window_bounds = array<i64: 1, 256>}, {transform_indices = @transform_3, window_bounds = array<i64: 8, 256>}]} {
    %c0 = arith.constant 0 : index
    %c0_0 = arith.constant 0 : index
    %0 = vector.load %arg1[%c0, %c0_0] : memref<8x256xf32, #tpu.memory_space<vmem>>, vector<8x256xf32>
    %c0_1 = arith.constant 0 : index
    %c0_2 = arith.constant 0 : index
    %1 = vector.load %arg2[%c0_1, %c0_2] : memref<1x256xf32, #tpu.memory_space<vmem>>, vector<1x256xf32>
    %2 = vector.broadcast %1 : vector<1x256xf32> to vector<8x256xf32>
    %3 = arith.mulf %0, %2 : vector<8x256xf32>
    %c0_3 = arith.constant 0 : index
    %c0_4 = arith.constant 0 : index
    %4 = vector.load %arg3[%c0_3, %c0_4] : memref<1x256xf32, #tpu.memory_space<vmem>>, vector<1x256xf32>
    %5 = vector.broadcast %4 : vector<1x256xf32> to vector<8x256xf32>
    %6 = arith.addf %3, %5 : vector<8x256xf32>
    %c0_5 = arith.constant 0 : index
    %c0_6 = arith.constant 0 : index
    %7 = vector.load %arg4[%c0_5, %c0_6] : memref<8x256xf32, #tpu.memory_space<vmem>>, vector<8x256xf32>
    tpu.vector_store %arg4[%c0_5, %c0_6], %6 {strides = array<i32>} : memref<8x256xf32, #tpu.memory_space<vmem>>, vector<8x256xf32>,
    return
  }
  func.func @transform_0(%arg0: i32) -> (i32, i32) {
    %c0_i32 = arith.constant 0 : i32
    %c0_i32_0 = arith.constant 0 : i32
    return %arg0, %c0_i32 : i32, i32
  }
  func.func @transform_1(%arg0: i32) -> (i32, i32) {
    %c0_i32 = arith.constant 0 : i32
    %c0_i32_0 = arith.constant 0 : i32
    %c0_i32_1 = arith.constant 0 : i32
    return %c0_i32, %c0_i32_0 : i32, i32
  }
  func.func @transform_2(%arg0: i32) -> (i32, i32) {
    %c0_i32 = arith.constant 0 : i32
    %c0_i32_0 = arith.constant 0 : i32
    %c0_i32_1 = arith.constant 0 : i32
    return %c0_i32, %c0_i32_0 : i32, i32
  }
  func.func @transform_3(%arg0: i32) -> (i32, i32) {
    %c0_i32 = arith.constant 0 : i32
    %c0_i32_0 = arith.constant 0 : i32
    return %arg0, %c0_i32 : i32, i32
  }
}

</mosaic_0001>

<bundles_post_ra>
// kernel: tpu_custom_call.1
= control target key start
LH: loop header
LB: loop body
LE: loop exit
PB: predicated region body
PF: predicated region fallthrough
CT: control target
= control target key end

     0   :  { %8 = vsyncpa [#allocation3], 0  ;;  %s362_s0 = inlined_call_operand.hbm [shape: f32[1,256], index: 0, kind: input, shape index: {}]   ;;  %s363_s1 = inlined_call_operand.hbm [shape: f32[1,256], index: 1, kind: input, shape index: {}]   ;;  %s364_s2 = inlined_call_operand.hbm [shape: f32[1,256], index: 2, kind: input, shape index: {}]   ;;  %s365_s3 = inlined_call_operand.hbm [shape: f32[1,256], index: 3, kind: output, shape index: {}]  }
   0x1   :  { %9 = vsyncpa [#allocation6], 0 }
   0x2   :  { %10 = vsyncpa [#allocation4], 0  ;;  %s29_s14 = sshll.u32 %s363_s1, 4  ;;  %s30_s14 = int_to_ptr.hbm [resolvable:$true] %s29_s14 }
   0x3   :  { %14 = vsyncadd [#allocation3], 224  ;;  %s286_s15 = smov [#allocation5]   ;;  %s15_s19 = sshll.u32 %s362_s0, 4  ;;  %s16_s19 = int_to_ptr.hbm [resolvable:$true] %s15_s19 }
   0x4   :  { %s31_s16 = sshll.u32 %s286_s15, 4  ;;  %s287_s20 = smov [#allocation2]   ;;  %s32_s16 = int_to_ptr.vmem [resolvable:$true] %s31_s16 }
   0x5   :  { %34 = dma.hbm_to_vmem [thread:$0]  %s30_s14, 32, %s32_s16, [#allocation6]  }
   0x6   :  { %s17_s21 = sshll.u32 %s287_s20, 4  ;;  %s288_s22 = smov 32   ;;  %s18_s21 = int_to_ptr.vmem [resolvable:$true] %s17_s21 }
   0x7   :  { %s289_s23 = smov 2   ;;  %s40_s25 = sshll.u32 %s364_s2, 4  ;;  %s41_s25 = int_to_ptr.hbm [resolvable:$true] %s40_s25 }
   0x8   :  { %23 = dma.hbm_to_vmem [thread:$0]  %s16_s19, 32, %s18_s21, [#allocation3], %s288_s22, %s288_s22, %s289_s23  }
   0x9   :  { %s290_s26 = smov [#allocation7]  }
   0xa   :  { %s42_s27 = sshll.u32 %s290_s26, 4  ;;  %s43_s27 = int_to_ptr.vmem [resolvable:$true] %s42_s27 }
   0xb   :  { %45 = dma.hbm_to_vmem [thread:$0]  %s41_s25, 32, %s43_s27, [#allocation6]  }
   0xc   :  { %280 = dma.done.wait [#allocation3], 256  }
   0xd   :  { %281 = vsyncadd [#allocation3], 4294967040 }
   0xe   :  { %282 = dma.done.wait [#allocation6], 64  }
   0xf   :  { %283 = vsyncadd [#allocation6], 4294967232  ;;  %v66_v0 = vld [vmem:[#allocation5] sm:$0x3]  ;;  %v110_v1 = vld [vmem:[#allocation7] sm:$0x3]  ;;  %v146_v2 = vlaneseq }
  0x10   :  { %v68_v3 = vperm.slane %v66_v0, 0  ;;  %v69_v4 = vperm.slane %v66_v0, 1  ;;  %v112_v5 = vperm.slane %v110_v1, 0  ;;  %v113_v6 = vperm.slane %v110_v1, 1  ;;  %v58_v7 = vld [vmem:[#allocation2] sm:$0x3] }
  0x11   :  { %vm71_vm0 = vcmask 1040384   ;;  %vm73_vm1 = vcmask 1041409   ;;  %vm76_vm2 = vcmask 1042434   ;;  %vm79_vm3 = vcmask 1043459   ;;  %v59_v13 = vld [vmem:[#allocation2 + $0x2] sm:$0x3] }
  0x12   :  { %v70_v8 = vrot.slane %v69_v4, 7  ;;  %v114_v9 = vrot.slane %v113_v6, 7  ;;  %vm82_vm4 = vcmask 1044484   ;;  %vm324_vm5 = vcmp.lt.s32.totalorder %v146_v2, 256  ;;  %v60_v19 = vld [vmem:[#allocation2 + $0x4] sm:$0x3] }
  0x13   :  { %vm85_vm6 = vcmask 1045509   ;;  %vm88_vm7 = vcmask 1046534   ;;  %vm91_vm8 = vcmask 1046528   ;;  %v61_v23 = vld [vmem:[#allocation2 + $0x6] sm:$0x3] }
  0x14   :  { %v72_v11 = vsel %vm71_vm0, %v68_v3, %v70_v8  ;;  %v115_v12 = vsel %vm71_vm0, %v112_v5, %v114_v9  ;;  %v74_v14 = vsel %vm73_vm1, %v68_v3, %v70_v8  ;;  %v116_v15 = vsel %vm73_vm1, %v112_v5, %v114_v9  ;;  %v62_v32 = vld [vmem:[#allocation2 + $0x8] sm:$0x3]  ;;  %v63_v40 = vld [vmem:[#allocation2 + $0xa] sm:$0x3]  ;;  %v64_v48 = vld [vmem:[#allocation2 + $0xc] sm:$0x3] }
  0x15   :  { %v102_v16 = vmul.f32 %v72_v11, %v58_v7  ;;  %v75_v17 = vrot.slane %v74_v14, 1  ;;  %v117_v18 = vrot.slane %v116_v15, 1  ;;  %v77_v20 = vsel %vm76_vm2, %v68_v3, %v70_v8  ;;  %v65_v51 = vld [vmem:[#allocation2 + $0xe] sm:$0x3] }
  0x16   :  { %v78_v21 = vrot.slane %v77_v20, 2  ;;  %v118_v22 = vsel %vm76_vm2, %v112_v5, %v114_v9  ;;  %v80_v24 = vsel %vm79_vm3, %v68_v3, %v70_v8  ;;  %v120_v25 = vsel %vm79_vm3, %v112_v5, %v114_v9 }
  0x17   :  { %v138_v26 = vadd.f32 %v115_v12, %v102_v16  ;;  %v103_v27 = vmul.f32 %v75_v17, %v59_v13  ;;  %v119_v28 = vrot.slane %v118_v22, 2  ;;  %v81_v29 = vrot.slane %v80_v24, 3 }
  0x18   :  { %v104_v30 = vmul.f32 %v78_v21, %v60_v19  ;;  %v121_v31 = vrot.slane %v120_v25, 3  ;;  %v83_v33 = vsel %vm82_vm4, %v68_v3, %v70_v8  ;;  %v122_v34 = vsel %vm82_vm4, %v112_v5, %v114_v9 }
  0x19   :  { %150 = vst.msk [vmem:[#allocation8] sm:$0x3] %vm324_vm5, %v138_v26  ;;  %v139_v35 = vadd.f32 %v117_v18, %v103_v27  ;;  %v105_v36 = vmul.f32 %v81_v29, %v61_v23  ;;  %v84_v37 = vrot.slane %v83_v33, 4  ;;  %v123_v38 = vrot.slane %v122_v34, 4 }
  0x1a   :  { %v140_v39 = vadd.f32 %v119_v28, %v104_v30  ;;  %v86_v41 = vsel %vm85_vm6, %v68_v3, %v70_v8  ;;  %v124_v42 = vsel %vm85_vm6, %v112_v5, %v114_v9  ;;  %v89_v43 = vsel %vm88_vm7, %v68_v3, %v70_v8 }
  0x1b   :  { %151 = vst.msk [vmem:[#allocation8 + $0x2] sm:$0x3] %vm324_vm5, %v139_v35  ;;  %v141_v44 = vadd.f32 %v121_v31, %v105_v36  ;;  %v106_v45 = vmul.f32 %v84_v37, %v62_v32  ;;  %v87_v46 = vrot.slane %v86_v41, 5  ;;  %v125_v47 = vrot.slane %v124_v42, 5 }
  0x1c   :  { %152 = vst.msk [vmem:[#allocation8 + $0x4] sm:$0x3] %vm324_vm5, %v140_v39  ;;  %v90_v49 = vrot.slane %v89_v43, 6  ;;  %v126_v50 = vsel %vm88_vm7, %v112_v5, %v114_v9  ;;  %v92_v52 = vsel %vm91_vm8, %v70_v8, %v68_v3  ;;  %v128_v53 = vsel %vm91_vm8, %v114_v9, %v112_v5 }
  0x1d   :  { %153 = vst.msk [vmem:[#allocation8 + $0x6] sm:$0x3] %vm324_vm5, %v141_v44  ;;  %v142_v54 = vadd.f32 %v123_v38, %v106_v45  ;;  %v107_v55 = vmul.f32 %v87_v46, %v63_v40  ;;  %v127_v56 = vrot.slane %v126_v50, 6  ;;  %v93_v57 = vrot.slane %v92_v52, 7 }
  0x1e   :  { %v108_v58 = vmul.f32 %v90_v49, %v64_v48  ;;  %v129_v59 = vrot.slane %v128_v53, 7 }
  0x1f   :  { %154 = vst.msk [vmem:[#allocation8 + $0x8] sm:$0x3] %vm324_vm5, %v142_v54  ;;  %v143_v60 = vadd.f32 %v125_v47, %v107_v55  ;;  %v109_v61 = vmul.f32 %v93_v57, %v65_v51 }
  0x20   :  { %v144_v62 = vadd.f32 %v127_v56, %v108_v58 }
  0x21   :  { %155 = vst.msk [vmem:[#allocation8 + $0xa] sm:$0x3] %vm324_vm5, %v143_v60  ;;  %v145_v63 = vadd.f32 %v129_v59, %v109_v61 }
  0x22   :  { %156 = vst.msk [vmem:[#allocation8 + $0xc] sm:$0x3] %vm324_vm5, %v144_v62 }
  0x23   :  { %157 = vst.msk [vmem:[#allocation8 + $0xe] sm:$0x3] %vm324_vm5, %v145_v63 }
  0x24   :  { %161 = vsyncadd [#allocation4], 224  ;;  %s164_s28 = sshll.u32 %s365_s3, 4  ;;  %s291_s29 = smov [#allocation8]   ;;  %s165_s28 = int_to_ptr.hbm [resolvable:$true] %s164_s28 }
  0x25   :  { %s162_s30 = sshll.u32 %s291_s29, 4  ;;  %s163_s30 = int_to_ptr.vmem [resolvable:$true] %s162_s30 }
  0x26   :  { %170 = dma.vmem_to_hbm [thread:$0]  %s163_s30, 32, %s165_s28, [#allocation4], %s288_s22, %s288_s22, %s289_s23  }
  0x27   :  { %284 = dma.done.wait [#allocation4], 256  }
  0x28   :  { %285 = vsyncadd [#allocation4], 4294967040 }
  0x29   :  { %175 = vsyncpa [#allocation3], 1 }
  0x2a   :  { %176 = vsyncpa [#allocation6], 1 }
  0x2b   :  { %177 = vsyncpa [#allocation4], 1 }

</bundles_post_ra>
